<compile_context>
chip_gen: v6e
topology: v6e:2x2x1
jax: 0.10.0
libtpu: 0.0.40
codegen_flags: <defaults>
</compile_context>

<pallas_src>
from functools import partial

import jax
import jax.numpy as jnp
from jax.experimental import pallas as pl
from jax.experimental.pallas import tpu as pltpu


def _round_up(x, m):
    return ((x + m - 1) // m) * m


def build_neg_adjacency(faces, nv):
    """(B, nv, nv) int8 with entry -count at every (directed + reversed) face edge.

    Matches torch.sparse_coo_tensor(row, col, -1) + its transpose (duplicates
    summed).  The scatter accumulates directly in int8 when the total number of
    directed edges per batch statically bounds every multiplicity at <= 127
    (wrap-proof); otherwise it accumulates in int16 and clips to [-127, 0]
    before narrowing, so the int8 result can never silently wrap.
    """
    B, F, L = faces.shape
    row = faces.reshape(B, -1)
    col = jnp.roll(faces, shift=-1, axis=-1).reshape(B, -1)     # next vertex, cyclic
    r = jnp.concatenate([row, col], axis=1).astype(jnp.int32)   # L + L.t()
    c = jnp.concatenate([col, row], axis=1).astype(jnp.int32)

    wrap_proof = (2 * F * L) <= 127          # no single entry can exceed 127
    acc_dtype = jnp.int8 if wrap_proof else jnp.int16
    upd = -jnp.ones(r.shape, dtype=acc_dtype)
    A = jnp.zeros((B, nv, nv), acc_dtype)
    # 2-D scatter-add (no flat r*nv+c index -> no int32 overflow for huge nv).
    A = jax.vmap(lambda a, ri, ci, u: a.at[ri, ci].add(u))(A, r, c, upd)
    if not wrap_proof:
        A = jnp.clip(A, -127, 0)
    return A.astype(jnp.int8)


def _lap_kernel_single_k(adj_ref, v_ref, o_ref, *, d, tm):
    """K axis collapsed (tk == Np): one MXU pass per (batch, row-tile)."""
    i = pl.program_id(1)
    a = adj_ref[0].astype(jnp.bfloat16)                                   # (tm, Np)
    # A @ [V | 1] = [A @ V | row_sum(A)]  -> degree falls out of the matmul.
    acc = jnp.dot(a, v_ref[0], preferred_element_type=jnp.float32)        # (tm, d+1)
    lii = -acc[:, d:d + 1]                                                # degree (tm, 1)
    vi = v_ref[0, pl.ds(pl.multiple_of(i * tm, 128), tm), :][:, :d]
    num = acc[:, :d] + lii * vi.astype(jnp.float32)                       # (A + diag(Lii)) @ V
    inv = pl.reciprocal(lii + 1e-12, approx=False)                        # exact: deg-0 rows -> 0
    o_ref[0] = (num * inv).astype(o_ref.dtype)


def _lap_kernel_multi_k(adj_ref, v_ref, o_ref, acc_ref, *, d, tm, tk):
    """Large meshes: stream (tm, tk) adjacency tiles, accumulate over k."""
    i = pl.program_id(1)
    k = pl.program_id(2)

    @pl.when(k == 0)
    def _init():
        acc_ref[...] = jnp.zeros_like(acc_ref)

    a = adj_ref[0].astype(jnp.bfloat16)                                   # (tm, tk)
    vk = v_ref[0, pl.ds(pl.multiple_of(k * tk, 128), tk), :]              # (tk, d+1) bf16
    acc_ref[...] += jnp.dot(a, vk, preferred_element_type=jnp.float32)

    @pl.when(k == pl.num_programs(2) - 1)
    def _finalize():
        acc = acc_ref[...]                                                # (tm, d+1)
        lii = -acc[:, d:d + 1]                                            # degree (tm, 1)
        vi = v_ref[0, pl.ds(pl.multiple_of(i * tm, 128), tm), :][:, :d]
        num = acc[:, :d] + lii * vi.astype(jnp.float32)
        inv = pl.reciprocal(lii + 1e-12, approx=False)
        o_ref[0] = (num * inv).astype(o_ref.dtype)


def uniform_laplacian(verts, faces, *, row_tile=512, k_tile=4096):
    """verts: (B, N, D) float, faces: (B, F, L) int -> (B, N, D)."""
    B, N, D = verts.shape

    # --- tiling (gen-safe: double-buffered adjacency <= 4 MiB on every gen) ---
    Np = _round_up(N, 128)
    tm = min(Np, row_tile)               # keep >=2 parallel units for v7x megacore
    Np = _round_up(Np, tm)
    if Np > k_tile:
        tk = k_tile                      # 512x4096 int8 tile = 2 MiB per buffer
        Np = _round_up(Np, tk)           # k_tile is a multiple of row_tile
    else:
        tk = Np                          # K axis collapses to a single step

    # Dense per-batch int8 adjacency (padded rows/cols stay zero -> inert).
    adj = build_neg_adjacency(faces, Np)                                  # (B, Np, Np) int8

    # Augmented bf16 V: [V | 1] so degree = -last accumulator column.
    v_aug = jnp.concatenate(
        [verts.astype(jnp.bfloat16), jnp.ones((B, N, 1), jnp.bfloat16)], axis=-1)
    if Np != N:
        v_aug = jnp.pad(v_aug, ((0, 0), (0, Np - N), (0, 0)))             # (B, Np, D+1)

    cost = pl.CostEstimate(
        flops=2 * B * Np * Np * (D + 1),
        transcendentals=0,
        bytes_accessed=(B * Np * Np                       # int8 adjacency
                        + B * Np * (D + 1) * 2            # bf16 resident V slab
                        + B * Np * D * verts.dtype.itemsize),
    )

    if tk == Np:
        grid = (B, Np // tm)
        kernel = partial(_lap_kernel_single_k, d=D, tm=tm)
        in_specs = [
            pl.BlockSpec((1, tm, Np), lambda b, i: (b, i, 0)),            # adjacency row tile
            pl.BlockSpec((1, Np, D + 1), lambda b, i: (b, 0, 0)),         # per-batch V slab
        ]
        out_spec = pl.BlockSpec((1, tm, D), lambda b, i: (b, i, 0))
        scratch = []
        semantics = ("parallel", "parallel")
    else:
        grid = (B, Np // tm, Np // tk)
        kernel = partial(_lap_kernel_multi_k, d=D, tm=tm, tk=tk)
        in_specs = [
            pl.BlockSpec((1, tm, tk), lambda b, i, k: (b, i, k)),         # adjacency tile
            pl.BlockSpec((1, Np, D + 1), lambda b, i, k: (b, 0, 0)),      # per-batch V slab
        ]
        out_spec = pl.BlockSpec((1, tm, D), lambda b, i, k: (b, i, 0))
        scratch = [pltpu.VMEM((tm, D + 1), jnp.float32)]
        semantics = ("parallel", "parallel", "arbitrary")

    out = pl.pallas_call(
        kernel,
        out_shape=jax.ShapeDtypeStruct((B, Np, D), verts.dtype),
        grid=grid,
        in_specs=in_specs,
        out_specs=out_spec,
        scratch_shapes=scratch,
        compiler_params=pltpu.CompilerParams(dimension_semantics=semantics),
        cost_estimate=cost,
    )(adj, v_aug)

    return out[:, :N, :]


if __name__ == "__main__":
    key = jax.random.PRNGKey(0)
    kv, kf = jax.random.split(key)

    B, N, D, F = 2, 16, 3, 24          # small mesh: 2 batches, 16 verts, 24 tri faces
    verts = jax.random.normal(kv, (B, N, D), dtype=jnp.float32)
    faces = jax.random.randint(kf, (B, F, 3), 0, N, dtype=jnp.int32)

    out = uniform_laplacian(verts, faces)
    out = jax.block_until_ready(out)

    # Pure-JAX reference of the PyTorch semantics (exact f32, exact divide).
    row = faces.reshape(B, -1)
    col = jnp.roll(faces, shift=-1, axis=-1).reshape(B, -1)
    r = jnp.concatenate([row, col], axis=1)
    c = jnp.concatenate([col, row], axis=1)
    A = jnp.zeros((B, N, N), jnp.float32)
    A = jax.vmap(lambda a, ri, ci: a.at[ri, ci].add(-1.0))(A, r, c)
    Lii = -A.sum(axis=2)
    Lfull = A + jax.vmap(jnp.diag)(Lii)
    ref = jnp.einsum("bij,bjd->bid", Lfull, verts) / (Lii[..., None] + 1e-12)

    assert out.shape == (B, N, D) and out.dtype == verts.dtype
    # 2e-2 tolerance: V is fed to the MXU in bf16 (adjacency counts are exact in
    # bf16 and accumulation is f32), so the result carries ~2^-9 relative
    # rounding from the vertex operand only.
    assert jnp.allclose(out, ref, atol=2e-2, rtol=2e-2), "mismatch vs reference"
    print("KERNEL_OK")
</pallas_src>

<mosaic_0001>
module attributes {stable_mosaic.version = 11 : i64} {
  func.func @_lap_kernel_single_k(%arg0: i32, %arg1: i32, %arg2: memref<1x128x128xi8, #tpu.memory_space<vmem>>, %arg3: memref<1x128x4xbf16, #tpu.memory_space<vmem>>, %arg4: memref<1x128x3xf32, #tpu.memory_space<vmem>>) attributes {dimension_semantics = [#tpu.dimension_semantics<parallel>, #tpu.dimension_semantics<parallel>], iteration_bounds = array<i64: 2, 1>, scalar_prefetch = 0 : i64, scratch_operands = 0 : i64, tpu.core_type = #tpu.core_type<tc>, window_params = [{transform_indices = @transform_0, window_bounds = array<i64: 1, 128, 128>}, {transform_indices = @transform_1, window_bounds = array<i64: 1, 128, 4>}, {transform_indices = @transform_2, window_bounds = array<i64: 1, 128, 3>}]} {
    %c0 = arith.constant 0 : index
    %c0_0 = arith.constant 0 : index
    %c0_1 = arith.constant 0 : index
    %0 = vector.load %arg2[%c0, %c0_0, %c0_1] : memref<1x128x128xi8, #tpu.memory_space<vmem>>, vector<1x128x128xi8>
    %1 = vector.shape_cast %0 : vector<1x128x128xi8> to vector<128x128xi8>
    %2 = arith.sitofp %1 : vector<128x128xi8> to vector<128x128xbf16>
    %c0_2 = arith.constant 0 : index
    %c0_3 = arith.constant 0 : index
    %c0_4 = arith.constant 0 : index
    %3 = vector.load %arg3[%c0_2, %c0_3, %c0_4] : memref<1x128x4xbf16, #tpu.memory_space<vmem>>, vector<1x128x4xbf16>
    %4 = vector.shape_cast %3 : vector<1x128x4xbf16> to vector<128x4xbf16>
    %cst = arith.constant dense<0.000000e+00> : vector<128x4xf32>
    %5 = tpu.matmul %2, %4, %cst {dimension_numbers = #tpu.dot_dimension_numbers<[1], [0], [0], [1], [0, 0, 1, 1], [], []>} : vector<128x128xbf16>, vector<128x4xbf16>, vector<128x4xf32> -> vector<128x4xf32>
    %6 = vector.extract_strided_slice %5 {offsets = [0, 3], sizes = [128, 1], strides = [1, 1]} : vector<128x4xf32> to vector<128x1xf32>
    %cst_5 = arith.constant 0.000000e+00 : f32
    %7 = vector.broadcast %cst_5 : f32 to vector<128x1xf32>
    %8 = arith.subf %7, %6 : vector<128x1xf32>
    %c128_i32 = arith.constant 128 : i32
    %9 = arith.muli %arg1, %c128_i32 : i32
    %10 = tpu.assume_multiple %9, 128 : i32
    %c0_6 = arith.constant 0 : index
    %11 = arith.index_cast %10 : i32 to index
    %c0_7 = arith.constant 0 : index
    %12 = vector.load %arg3[%c0_6, %11, %c0_7] : memref<1x128x4xbf16, #tpu.memory_space<vmem>>, vector<1x128x4xbf16>
    %13 = vector.shape_cast %12 : vector<1x128x4xbf16> to vector<128x4xbf16>
    %14 = vector.extract_strided_slice %13 {offsets = [0, 0], sizes = [128, 3], strides = [1, 1]} : vector<128x4xbf16> to vector<128x3xbf16>
    %15 = vector.extract_strided_slice %5 {offsets = [0, 0], sizes = [128, 3], strides = [1, 1]} : vector<128x4xf32> to vector<128x3xf32>
    %16 = arith.extf %14 : vector<128x3xbf16> to vector<128x3xf32>
    %17 = vector.broadcast %8 : vector<128x1xf32> to vector<128x3xf32>
    %18 = arith.mulf %17, %16 : vector<128x3xf32>
    %19 = arith.addf %15, %18 : vector<128x3xf32>
    %cst_8 = arith.constant 9.99999996E-13 : f32
    %20 = vector.broadcast %cst_8 : f32 to vector<128x1xf32>
    %21 = arith.addf %8, %20 : vector<128x1xf32>
    %22 = tpu.reciprocal %21 : vector<128x1xf32> -> vector<128x1xf32>
    %23 = vector.broadcast %22 : vector<128x1xf32> to vector<128x3xf32>
    %24 = arith.mulf %19, %23 : vector<128x3xf32>
    %c0_9 = arith.constant 0 : index
    %c0_10 = arith.constant 0 : index
    %c0_11 = arith.constant 0 : index
    %25 = vector.load %arg4[%c0_9, %c0_10, %c0_11] : memref<1x128x3xf32, #tpu.memory_space<vmem>>, vector<1x128x3xf32>
    %26 = vector.shape_cast %25 : vector<1x128x3xf32> to vector<128x3xf32>
    %27 = vector.shape_cast %24 : vector<128x3xf32> to vector<1x128x3xf32>
    tpu.vector_store %arg4[%c0_9, %c0_10, %c0_11], %27 {strides = array<i32>} : memref<1x128x3xf32, #tpu.memory_space<vmem>>, vector<1x128x3xf32>,
    return
  }
  func.func @transform_0(%arg0: i32, %arg1: i32) -> (i32, i32, i32) {
    %c0_i32 = arith.constant 0 : i32
    %c0_i32_0 = arith.constant 0 : i32
    return %arg0, %arg1, %c0_i32 : i32, i32, i32
  }
  func.func @transform_1(%arg0: i32, %arg1: i32) -> (i32, i32, i32) {
    %c0_i32 = arith.constant 0 : i32
    %c0_i32_0 = arith.constant 0 : i32
    %c0_i32_1 = arith.constant 0 : i32
    return %arg0, %c0_i32, %c0_i32_0 : i32, i32, i32
  }
  func.func @transform_2(%arg0: i32, %arg1: i32) -> (i32, i32, i32) {
    %c0_i32 = arith.constant 0 : i32
    %c0_i32_0 = arith.constant 0 : i32
    return %arg0, %arg1, %c0_i32 : i32, i32, i32
  }
}

</mosaic_0001>

<bundles_post_ra>
// kernel: tpu_custom_call.1
= control target key start
LH: loop header
LB: loop body
LE: loop exit
PB: predicated region body
PF: predicated region fallthrough
CT: control target
= control target key end

     0   :  { %s1022_s9 = smov 0   ;;  %s1024_s10 = smov 0   ;;  %s1203_s0 = inlined_call_operand.vmem [shape: s8[2,128,128], index: 0, kind: input, shape index: {}]   ;;  %s1204_s1 = inlined_call_operand.vmem [shape: bf16[2,128,4], index: 1, kind: input, shape index: {}]   ;;  %s1205_s2 = inlined_call_operand.vmem [shape: f32[2,128,3], index: 2, kind: output, shape index: {}]  }
   0x1   :  { %s1026_s11 = smov 0  }
   0x2 LB: > { %s24_s12 = sadd.s32 1, %s1000_s10  ;;  %p792_p0 = scmp.ge.s32.totalorder %s1004_s11, 1  ;;  %s1004_s11 = sphi %s1026_s11, %s12_s11   ;;  %s1000_s10 = sphi %s1024_s10, %s1207_s10   ;;  %s996_s9 = sphi %s1022_s9, %s1206_s9  }
   0x3   : > { %p26_p1 = scmp.ge.s32.totalorder %s24_s12, 2  ;;  %p143_p2 = scmp.lt.s32.totalorder %s1004_s11, 3 }
   0x5   : > { %s1209_s12 = smov (%p26_p1, %s24_s12), 0  ;;  %p144_p3 = pnand %p792_p0, %p143_p2 }
   0x6   : > { %p179_p4 = scmp.lt.s32.totalorder (!%p144_p3), %s996_s9, 1 }
   0x7   : > { %147 = sbr.rel (%p144_p3) target bundleno = 430 (0x1ae), region = 28 }
   0xc   : > { %s1211_s9 = smov (!%p179_p4, %s996_s9), 1  ;;  %v1006_v20 = vmov 3   ;;  %vm670_vm0 = vcmask 23552  }
   0xd   : > { %s810_s13 = sshll.u32 %s1211_s9, 6  ;;  %s809_s17 = sshll.u32 %s1211_s9, 5  ;;  %941 = vset.pattern.permute.xlu0 %v1006_v20  ;;  %940 = vset.pattern.permute.xlu1 %v1006_v20 }
   0xe   : > { %s1046_s16 = scalar_lea.vmem %s1204_s1, %s810_s13  ;;  %s1055_s20 = scalar_lea.vmem %s1203_s0, %s809_s17 }
   0xf   : > { %v942_v0 = vld [vmem:[%s1046_s16 + $0x38] sm:$0xff]   ;;  %v943_v1 = vld [vmem:[%s1046_s16 + $0x30] sm:$0xff]   ;;  %v944_v2 = vld [vmem:[%s1046_s16 + $0x28] sm:$0xff]   ;;  %s811_s21 = sshll.u32 %s1211_s9, 7 }
  0x10   : > { %867 = vmatprep.subr.bf16.mxu0 %v942_v0  ;;  %899 = vmatprep.subr.bf16.mxu1 %v942_v0  ;;  %v945_v3 = vld [vmem:[%s1046_s16 + $0x20] sm:$0xff]   ;;  %v206_v5 = vld [vmem:[%s1055_s20 + $0x10] sm:$0xff]  ;;  %v946_v8 = vld [vmem:[%s1046_s16 + $0x18] sm:$0xff]   ;;  %s1136_s24 = scalar_lea.vmem %s1205_s2, %s811_s21 }
  0x11   : > { %868 = vmatpush3.bf16.msra.mxu0 %v942_v0  ;;  %907 = vmatpush3.bf16.msra.mxu1 %v942_v0  ;;  %v204_v4 = vld [vmem:[%s1055_s20] sm:$0xff]  ;;  %v212_v7 = vunpack.c.l.s8.bf16 %v206_v5  ;;  %v947_v9 = vld [vmem:[%s1046_s16 + $0x10] sm:$0xff]   ;;  %v948_v10 = vld [vmem:[%s1046_s16 + $0x8] sm:$0xff]   ;;  %v213_v15 = vunpack.c.h.s8.bf16 %v206_v5 }
  0x12   : > { %869 = vmatprep.subr.bf16.mxu0 %v943_v1  ;;  %900 = vmatprep.subr.bf16.mxu1 %v943_v1  ;;  %v208_v6 = vunpack.c.l.s8.bf16 %v204_v4  ;;  %v949_v11 = vld [vmem:[%s1046_s16] sm:$0xff]   ;;  %v205_v12 = vld [vmem:[%s1055_s20 + $0x8] sm:$0xff]  ;;  %v207_v13 = vld [vmem:[%s1055_s20 + $0x18] sm:$0xff]  ;;  %v209_v14 = vunpack.c.h.s8.bf16 %v204_v4 }
  0x13   : > { %891 = vmatprep.mubr.bf16.mxu1 %v212_v7  ;;  %v210_v16 = vunpack.c.l.s8.bf16 %v205_v12  ;;  %v214_v17 = vunpack.c.l.s8.bf16 %v207_v13  ;;  %v211_v18 = vunpack.c.h.s8.bf16 %v205_v12  ;;  %v215_v19 = vunpack.c.h.s8.bf16 %v207_v13 }
  0x14   : > { %883 = vmatprep.mubr.bf16.mxu0 %v208_v6 }
  0x15   : > { %870 = vmatpush3.bf16.msra.mxu0 %v943_v1  ;;  %908 = vmatpush3.bf16.msra.mxu1 %v943_v1 }
  0x16   : > { %871 = vmatprep.subr.bf16.mxu0 %v944_v2  ;;  %901 = vmatprep.subr.bf16.mxu1 %v944_v2 }
  0x19   : > { %872 = vmatpush3.bf16.msra.mxu0 %v944_v2  ;;  %909 = vmatpush3.bf16.msra.mxu1 %v944_v2 }
  0x1a   : > { %873 = vmatprep.subr.bf16.mxu0 %v945_v3  ;;  %902 = vmatprep.subr.bf16.mxu1 %v945_v3 }
  0x1d   : > { %874 = vmatpush3.bf16.msra.mxu0 %v945_v3  ;;  %910 = vmatpush3.bf16.msra.mxu1 %v945_v3 }
  0x1e   : > { %875 = vmatprep.subr.bf16.mxu0 %v946_v8  ;;  %903 = vmatprep.subr.bf16.mxu1 %v946_v8 }
  0x21   : > { %876 = vmatpush3.bf16.msra.mxu0 %v946_v8  ;;  %911 = vmatpush3.bf16.msra.mxu1 %v946_v8 }
  0x22   : > { %877 = vmatprep.subr.bf16.mxu0 %v947_v9  ;;  %904 = vmatprep.subr.bf16.mxu1 %v947_v9 }
  0x25   : > { %878 = vmatpush3.bf16.msra.mxu0 %v947_v9  ;;  %912 = vmatpush3.bf16.msra.mxu1 %v947_v9 }
  0x26   : > { %879 = vmatprep.subr.bf16.mxu0 %v948_v10  ;;  %905 = vmatprep.subr.bf16.mxu1 %v948_v10 }
  0x29   : > { %880 = vmatpush3.bf16.msra.mxu0 %v948_v10  ;;  %913 = vmatpush3.bf16.msra.mxu1 %v948_v10 }
  0x2a   : > { %881 = vmatprep.subr.bf16.mxu0 %v949_v11  ;;  %906 = vmatprep.subr.bf16.mxu1 %v949_v11 }
  0x2d   : > { %882 = vmatpush3.bf16.msra.mxu0 %v949_v11  ;;  %914 = vmatpush3.bf16.msra.mxu1 %v949_v11 }
  0x30   : > { %884 = vmatmul.mubr.bf16.vlgmr.msra.gmra.mxu0 %v209_v14  ;;  %892 = vmatmul.mubr.bf16.vlgmr.msra.gmra.mxu1 %v213_v15 }
  0x31   : > { %887 = vmatprep.mubr.bf16.mxu0 %v210_v16  ;;  %895 = vmatprep.mubr.bf16.mxu1 %v214_v17 }
  0x38   : > { %888 = vmatmul.mubr.bf16.gmra.mxu0 %v211_v18  ;;  %896 = vmatmul.mubr.bf16.gmra.mxu1 %v215_v19 }
  0xf0   : > { %v1066_v21 = vpop.f32.mrf.mxu0  ;;  %v1068_v22 = vpop.f32.mrf.mxu1 }
  0xf1   : > { %v387_v23 = vsub.f32 0.0, %v1068_v22  ;;  %v379_v24 = vsub.f32 0.0, %v1066_v21 }
  0xf2   : > { %v1072_v25 = vpop.f32.mrf.mxu0  ;;  %v1074_v26 = vpop.f32.mrf.mxu1 }
  0xf3   : > { %482 = vperm.xlu0 %941, %v387_v23   ;;  %442 = vperm.xlu1 %940, %v379_v24   ;;  %v377_v28 = vsub.f32 0.0, %v1072_v25  ;;  %v385_v33 = vsub.f32 0.0, %v1074_v26  ;;  %v544_v41 = vadd.f32 1e-12, %v379_v24  ;;  %v552_v46 = vadd.f32 1e-12, %v387_v23 }
  0xf4   : > { %v1076_v27 = vpop.f32.mrf.mxu0  ;;  %v1080_v30 = vpop.f32.mrf.mxu1 }
  0xf5   : > { %v380_v29 = vsub.f32 0.0, %v1076_v27  ;;  %v388_v34 = vsub.f32 0.0, %v1080_v30  ;;  %950 = vrcp.f32 %v544_v41  ;;  %v542_v52 = vadd.f32 1e-12, %v377_v28 }
  0xf6   : > { %v1082_v31 = vpop.f32.mrf.mxu0  ;;  %v1088_v35 = vpop.f32.mrf.mxu1  ;;  %v550_v57 = vadd.f32 1e-12, %v385_v33 }
  0xf7   : > { %432 = vperm.xlu0 %941, %v377_v28   ;;  %447 = vperm.xlu1 %940, %v380_v29   ;;  %v378_v38 = vsub.f32 0.0, %v1082_v31  ;;  %v386_v39 = vsub.f32 0.0, %v1088_v35  ;;  %v545_v43 = vadd.f32 1e-12, %v380_v29  ;;  %v553_v48 = vadd.f32 1e-12, %v388_v34 }
  0xf8   : > { %v1084_v32 = vpop.f32.mrf.mxu0  ;;  %v1092_v37 = vpop.f32.mrf.mxu1 }
  0xf9   : > { %v383_v44 = vsub.f32 0.0, %v1084_v32  ;;  %952 = vrcp.f32 %v545_v43  ;;  %v391_v49 = vsub.f32 0.0, %v1092_v37  ;;  %v543_v53 = vadd.f32 1e-12, %v378_v38 }
  0xfa   : > { %v1090_v36 = vpop.f32.mrf.mxu0  ;;  %v1098_v42 = vpop.f32.mrf.mxu1  ;;  %954 = vrcp.f32 %v552_v46  ;;  %v551_v58 = vadd.f32 1e-12, %v386_v39 }
  0xfb   : > { %472 = vperm.xlu0 %941, %v385_v33   ;;  %487 = vperm.xlu1 %940, %v388_v34   ;;  %956 = vrcp.f32 %v553_v48  ;;  %v381_v54 = vsub.f32 0.0, %v1090_v36  ;;  %v389_v59 = vsub.f32 0.0, %v1098_v42  ;;  %v548_v61 = vadd.f32 1e-12, %v383_v44 }
  0xfc   : > { %v1096_v40 = vpop.f32.mrf.mxu0  ;;  %v1102_v47 = vpop.f32.mrf.mxu1  ;;  %958 = vrcp.f32 %v542_v52  ;;  %v556_v9 = vadd.f32 1e-12, %v391_v49 }
  0xfd   : > { %v384_v45 = vsub.f32 0.0, %v1096_v40  ;;  %v392_v50 = vsub.f32 0.0, %v1102_v47  ;;  %960 = vrcp.f32 %v543_v53  ;;  %v546_v1 = vadd.f32 1e-12, %v381_v54 }
  0xfe   : > { %v1106_v51 = vpop.f32.mrf.mxu0  ;;  %v1110_v56 = vpop.f32.mrf.mxu1  ;;  %962 = vrcp.f32 %v550_v57  ;;  %v554_v5 = vadd.f32 1e-12, %v389_v59  ;;  %v813_v57 = vld [vmem:[%s1046_s16] sm:$0xff]  }
  0xff   : > { %477 = vperm.xlu1 %940, %v386_v39   ;;  %437 = vperm.xlu0 %941, %v378_v38   ;;  %v382_v55 = vsub.f32 0.0, %v1106_v51  ;;  %v390_v60 = vsub.f32 0.0, %v1110_v56  ;;  %964 = vrcp.f32 %v551_v58  ;;  %v549_v63 = vadd.f32 1e-12, %v384_v45 }
 0x100   : > { %966 = vrcp.f32 %v548_v61  ;;  %v557_v11 = vadd.f32 1e-12, %v392_v50 }
 0x101   : > { %968 = vrcp.f32 %v549_v63  ;;  %v547_v3 = vadd.f32 1e-12, %v382_v55  ;;  %v555_v7 = vadd.f32 1e-12, %v390_v60  ;;  %v815_v63 = vunpack.c.h.bf16 %v813_v57 }
 0x102   : > { %v951_v62 = vpop.eup %950  ;;  %970 = vrcp.f32 %v546_v1  ;;  %v847_v1 = vld [vmem:[%s1046_s16 + $0x20] sm:$0xff]  }
 0x103   : > { %462 = vperm.xlu0 %941, %v383_v44   ;;  %467 = vperm.xlu1 %940, %v384_v45   ;;  %972 = vrcp.f32 %v547_v3  ;;  %v844_v44 = vld [vmem:[%s1046_s16 + $0x8] sm:$0xff]  }
 0x104   : > { %974 = vrcp.f32 %v554_v5  ;;  %v818_v48 = vunpack.c.l.bf16 %v844_v44 }
 0x105   : > { %976 = vrcp.f32 %v555_v7 }
 0x106   : > { %v953_v0 = vpop.eup %952  ;;  %978 = vrcp.f32 %v556_v9  ;;  %v830_v9 = vunpack.c.l.bf16 %v847_v1 }
 0x107   : > { %502 = vperm.xlu0 %941, %v391_v49   ;;  %507 = vperm.xlu1 %940, %v392_v50   ;;  %v955_v2 = vpop.eup %954  ;;  %980 = vrcp.f32 %v557_v11  ;;  %v819_v49 = vunpack.c.h.bf16 %v844_v44  ;;  %v848_v50 = vld [vmem:[%s1046_s16 + $0x28] sm:$0xff]  }
 0x108   : > { %v957_v4 = vpop.eup %956 }
 0x109   : > { %v959_v6 = vpop.eup %958 }
 0x10a   : > { %v961_v8 = vpop.eup %960 }
 0x10b   : > { %452 = vperm.xlu0 %941, %v381_v54   ;;  %457 = vperm.xlu1 %940, %v382_v55   ;;  %v963_v10 = vpop.eup %962  ;;  %v834_v54 = vunpack.c.l.bf16 %v848_v50 }
 0x10c   : > { %v965_v12 = vpop.eup %964 }
 0x10d   : > { %v967_v13 = vpop.eup %966 }
 0x10e   : > { %v969_v14 = vpop.eup %968 }
 0x10f   : > { %492 = vperm.xlu0 %941, %v389_v59   ;;  %497 = vperm.xlu1 %940, %v390_v60   ;;  %v971_v15 = vpop.eup %970  ;;  %v835_v59 = vunpack.c.h.bf16 %v848_v50 }
 0x110   : > { %v973_v16 = vpop.eup %972 }
 0x111   : > { %v975_v17 = vpop.eup %974 }
 0x112   : > { %v977_v18 = vpop.eup %976 }
 0x113   : > { %586 = vperm.xlu0 %941, %v951_v62   ;;  %591 = vperm.xlu1 %940, %v953_v0   ;;  %v979_v19 = vpop.eup %978  ;;  %v814_v62 = vunpack.c.l.bf16 %v813_v57 }
 0x114   : > { %v981_v20 = vpop.eup %980 }
 0x117   : > { %626 = vperm.xlu0 %941, %v955_v2   ;;  %631 = vperm.xlu1 %940, %v957_v4  }
 0x11b   : > { %576 = vperm.xlu0 %941, %v959_v6   ;;  %581 = vperm.xlu1 %940, %v961_v8  }
 0x11f   : > { %616 = vperm.xlu0 %941, %v963_v10   ;;  %621 = vperm.xlu1 %940, %v965_v12   ;;  %v831_v10 = vunpack.c.h.bf16 %v847_v1 }
 0x123   : > { %606 = vperm.xlu0 %941, %v967_v13   ;;  %611 = vperm.xlu1 %940, %v969_v14  }
 0x127   : > { %596 = vperm.xlu0 %941, %v971_v15   ;;  %601 = vperm.xlu1 %940, %v973_v16  }
 0x12b   : > { %636 = vperm.xlu0 %941, %v975_v17   ;;  %641 = vperm.xlu1 %940, %v977_v18  }
 0x12f   : > { %646 = vperm.xlu0 %941, %v979_v19   ;;  %651 = vperm.xlu1 %940, %v981_v20  }
 0x16e   : > { %v483_v23 = vpop.permute.xlu0 %482  ;;  %v443_v24 = vpop.permute.xlu1 %442 }
 0x16f   : > { %v512_v55 = vmul.f32 %v818_v48, %v443_v24  ;;  %v520_v0 = vmul.f32 %v834_v54, %v483_v23  ;;  %v845_v24 = vld [vmem:[%s1046_s16 + $0x10] sm:$0xff]  }
 0x170   : > { %v822_v44 = vunpack.c.l.bf16 %v845_v24  ;;  %v823_v48 = vunpack.c.h.bf16 %v845_v24 }
 0x171   : > { %v528_v3 = vadd.f32 %v1066_v21, %v512_v55  ;;  %v536_v12 = vadd.f32 %v1068_v22, %v520_v0 }
 0x172   : > { %v433_v28 = vpop.permute.xlu0 %432  ;;  %v448_v29 = vpop.permute.xlu1 %447 }
 0x173   : > { %v513_v58 = vmul.f32 %v819_v49, %v448_v29  ;;  %v510_v11 = vmul.f32 %v814_v62, %v433_v28  ;;  %v849_v49 = vld [vmem:[%s1046_s16 + $0x30] sm:$0xff]  }
 0x175   : > { %v529_v4 = vadd.f32 %v1076_v27, %v513_v58  ;;  %v846_v27 = vld [vmem:[%s1046_s16 + $0x18] sm:$0xff]   ;;  %v526_v22 = vadd.f32 %v510_v11, %v1072_v25  ;;  %v838_v58 = vunpack.c.l.bf16 %v849_v49 }
 0x176   : > { %v473_v33 = vpop.permute.xlu0 %472  ;;  %v488_v34 = vpop.permute.xlu1 %487  ;;  %v826_v18 = vunpack.c.l.bf16 %v846_v27  ;;  %v827_v19 = vunpack.c.h.bf16 %v846_v27 }
 0x177   : > { %v521_v2 = vmul.f32 %v835_v59, %v488_v34  ;;  %v518_v20 = vmul.f32 %v830_v9, %v473_v33  ;;  %v839_v59 = vunpack.c.h.bf16 %v849_v49 }
 0x179   : > { %v537_v13 = vadd.f32 %v1080_v30, %v521_v2  ;;  %v534_v25 = vadd.f32 %v518_v20, %v1074_v26 }
 0x17a   : > { %v478_v38 = vpop.permute.xlu1 %477  ;;  %v438_v39 = vpop.permute.xlu0 %437 }
 0x17b   : > { %v511_v21 = vmul.f32 %v815_v63, %v438_v39  ;;  %v519_v23 = vmul.f32 %v831_v10, %v478_v38 }
 0x17d   : > { %v527_v30 = vadd.f32 %v511_v21, %v1082_v31  ;;  %v535_v31 = vadd.f32 %v519_v23, %v1088_v35 }
 0x17e   : > { %v463_v41 = vpop.permute.xlu0 %462  ;;  %v468_v43 = vpop.permute.xlu1 %467 }
 0x17f   : > { %v516_v33 = vmul.f32 %v826_v18, %v463_v41  ;;  %v517_v38 = vmul.f32 %v827_v19, %v468_v43  ;;  %v850_v41 = vld [vmem:[%s1046_s16 + $0x38] sm:$0xff]  }
 0x181   : > { %v532_v26 = vadd.f32 %v1084_v32, %v516_v33  ;;  %v533_v35 = vadd.f32 %v1096_v40, %v517_v38 }
 0x182   : > { %v1115_v45 = vpop.permute.xlu0 %502  ;;  %v1117_v46 = vpop.permute.xlu1 %507 }
 0x186   : > { %v1120_v52 = vpop.permute.xlu0 %452  ;;  %v1122_v53 = vpop.permute.xlu1 %457 }
 0x187   : > { %v514_v43 = vmul.f32 %v822_v44, %v1120_v52  ;;  %v515_v62 = vmul.f32 %v823_v48, %v1122_v53 }
 0x189   : > { %v530_v32 = vadd.f32 %v514_v43, %v1090_v36  ;;  %v531_v40 = vadd.f32 %v515_v62, %v1106_v51 }
 0x18a   : > { %v1125_v60 = vpop.permute.xlu0 %492  ;;  %v1127_v61 = vpop.permute.xlu1 %497 }
 0x18b   : > { %v522_v52 = vmul.f32 %v838_v58, %v1125_v60  ;;  %v523_v53 = vmul.f32 %v839_v59, %v1127_v61 }
 0x18d   : > { %v538_v36 = vadd.f32 %v522_v52, %v1098_v42  ;;  %v539_v61 = vadd.f32 %v523_v53, %v1110_v56 }
 0x18e   : > { %v587_v5 = vpop.permute.xlu0 %586  ;;  %v592_v6 = vpop.permute.xlu1 %591 }
 0x18f   : > { %v656_v7 = vmul.f32 %v587_v5, %v528_v3  ;;  %v657_v8 = vmul.f32 %v592_v6, %v529_v4  ;;  %v842_v3 = vunpack.c.l.bf16 %v850_v41  ;;  %v843_v4 = vunpack.c.h.bf16 %v850_v41 }
 0x191   : > { %673 = vst.msk [vmem:[%s1136_s24 + $0x10] sm:$0xff] %vm670_vm0, %v656_v7  ;;  %674 = vst.msk [vmem:[%s1136_s24 + $0x18] sm:$0xff] %vm670_vm0, %v657_v8  ;;  %v524_v9 = vmul.f32 %v842_v3, %v1115_v45  ;;  %v525_v60 = vmul.f32 %v843_v4, %v1117_v46 }
 0x192   : > { %v627_v14 = vpop.permute.xlu0 %626  ;;  %v632_v15 = vpop.permute.xlu1 %631 }
 0x193   : > { %v664_v16 = vmul.f32 %v627_v14, %v536_v12  ;;  %v665_v17 = vmul.f32 %v632_v15, %v537_v13  ;;  %v540_v45 = vadd.f32 %v1092_v37, %v524_v9  ;;  %v541_v46 = vadd.f32 %v1102_v47, %v525_v60 }
 0x195   : > { %681 = vst.msk [vmem:[%s1136_s24 + $0x50] sm:$0xff] %vm670_vm0, %v664_v16  ;;  %682 = vst.msk [vmem:[%s1136_s24 + $0x58] sm:$0xff] %vm670_vm0, %v665_v17 }
 0x196   : > { %v577_v28 = vpop.permute.xlu0 %576  ;;  %v582_v29 = vpop.permute.xlu1 %581 }
 0x197   : > { %v654_v34 = vmul.f32 %v577_v28, %v526_v22  ;;  %v655_v39 = vmul.f32 %v582_v29, %v527_v30 }
 0x199   : > { %671 = vst.msk [vmem:[%s1136_s24] sm:$0xff] %vm670_vm0, %v654_v34  ;;  %672 = vst.msk [vmem:[%s1136_s24 + $0x8] sm:$0xff] %vm670_vm0, %v655_v39 }
 0x19a   : > { %v617_v50 = vpop.permute.xlu0 %616  ;;  %v622_v54 = vpop.permute.xlu1 %621 }
 0x19b   : > { %v662_v55 = vmul.f32 %v617_v50, %v534_v25  ;;  %v663_v57 = vmul.f32 %v622_v54, %v535_v31 }
 0x19d   : > { %679 = vst.msk [vmem:[%s1136_s24 + $0x40] sm:$0xff] %vm670_vm0, %v662_v55  ;;  %680 = vst.msk [vmem:[%s1136_s24 + $0x48] sm:$0xff] %vm670_vm0, %v663_v57 }
 0x19e   : > { %v607_v63 = vpop.permute.xlu0 %606  ;;  %v612_v0 = vpop.permute.xlu1 %611 }
 0x19f   : > { %v660_v1 = vmul.f32 %v607_v63, %v532_v26  ;;  %v661_v2 = vmul.f32 %v612_v0, %v533_v35 }
 0x1a1   : > { %677 = vst.msk [vmem:[%s1136_s24 + $0x30] sm:$0xff] %vm670_vm0, %v660_v1  ;;  %678 = vst.msk [vmem:[%s1136_s24 + $0x38] sm:$0xff] %vm670_vm0, %v661_v2 }
 0x1a2   : > { %v597_v5 = vpop.permute.xlu0 %596  ;;  %v602_v6 = vpop.permute.xlu1 %601 }
 0x1a3   : > { %v658_v7 = vmul.f32 %v597_v5, %v530_v32  ;;  %v659_v8 = vmul.f32 %v602_v6, %v531_v40 }
 0x1a5   : > { %675 = vst.msk [vmem:[%s1136_s24 + $0x20] sm:$0xff] %vm670_vm0, %v658_v7  ;;  %676 = vst.msk [vmem:[%s1136_s24 + $0x28] sm:$0xff] %vm670_vm0, %v659_v8 }
 0x1a6   : > { %v637_v51 = vpop.permute.xlu0 %636  ;;  %v642_v10 = vpop.permute.xlu1 %641 }
 0x1a7   : > { %v666_v11 = vmul.f32 %v637_v51, %v538_v36  ;;  %v667_v21 = vmul.f32 %v642_v10, %v539_v61 }
 0x1a9   : > { %683 = vst.msk [vmem:[%s1136_s24 + $0x60] sm:$0xff] %vm670_vm0, %v666_v11  ;;  %684 = vst.msk [vmem:[%s1136_s24 + $0x68] sm:$0xff] %vm670_vm0, %v667_v21 }
 0x1aa   : > { %v647_v27 = vpop.permute.xlu0 %646  ;;  %v652_v12 = vpop.permute.xlu1 %651 }
 0x1ab   : > { %v668_v13 = vmul.f32 %v647_v27, %v540_v45  ;;  %v669_v14 = vmul.f32 %v652_v12, %v541_v46 }
 0x1ad   : > { %685 = vst.msk [vmem:[%s1136_s24 + $0x70] sm:$0xff] %vm670_vm0, %v668_v13  ;;  %686 = vst.msk [vmem:[%s1136_s24 + $0x78] sm:$0xff] %vm670_vm0, %v669_v14 }
 0x1ae PF: > { %s12_s11 = sadd.s32 1, %s1004_s11   ;;  %s1206_s9 = smov %s1000_s10 }
 0x1af   : > { %p9_p5 = scmp.ge.s32.totalorder %s12_s11, 4   ;;  %s1207_s10 = smov %s1209_s12 }
 0x1b1   :  { %11 = sbr.rel (!%p9_p5) target bundleno = 2 (0x2), region = 62 }

</bundles_post_ra>
